<compile_context>
chip_gen: v6e
topology: v6e:2x2x1
jax: 0.10.0
libtpu: 0.0.40
codegen_flags: <defaults>
</compile_context>

<pallas_src>
import jax
import jax.numpy as jnp
from jax.experimental import pallas as pl
from jax.experimental.pallas import tpu as pltpu


def dense_mlp_kernel(x_ref,
                     w1_ref, b1_ref,
                     w2_ref, b2_ref,
                     w3_ref, b3_ref,
                     w4_ref, b4_ref,
                     w5_ref, b5_ref,
                     w6_ref, b6_ref,
                     o_ref):
    """One batch tile of the whole MLP in feature-major layout.

    x_ref:  (x_dim, TB) bf16 activation tile (batch on lanes).
    wN_ref: (out, in)   bf16, VMEM-resident across the grid.
    bN_ref: (out, 1)    f32, broadcast along lanes.
    o_ref:  (y_dim, TB) f32 output tile (lane-dense store).
    """
    def layer(h_bf16, w_ref, b_ref, relu):
        # bf16 MXU operands, f32 accumulation; bias add + ReLU on the VPU in f32.
        y = jnp.dot(w_ref[...], h_bf16,
                    preferred_element_type=jnp.float32) + b_ref[...]
        return jnp.maximum(y, 0.0) if relu else y

    h = x_ref[...]                                                    # (x_dim, TB) bf16
    h = layer(h, w1_ref, b1_ref, relu=True).astype(jnp.bfloat16)      # x_dim -> 30
    h = layer(h, w2_ref, b2_ref, relu=True).astype(jnp.bfloat16)      # 30 -> 20
    h = layer(h, w3_ref, b3_ref, relu=True).astype(jnp.bfloat16)      # 20 -> 15
    h = layer(h, w4_ref, b4_ref, relu=True).astype(jnp.bfloat16)      # 15 -> 10
    h = layer(h, w5_ref, b5_ref, relu=True).astype(jnp.bfloat16)      # 10 -> 5
    h = layer(h, w6_ref, b6_ref, relu=False)                          # 5  -> y_dim (y_pre)
    o_ref[...] = h.astype(o_ref.dtype)


def dense_forward(x, params, tb=8192):
    """Forward pass of the Dense module (returns y_pre, no sigmoid).

    x:      (B, x_dim) f32
    params: list of (W, b) with W shape (in, out), b shape (1, out)  [PyTorch layout]
    tb:     batch tile (lane axis) -> rounded to a multiple of 128.
    """
    B, x_dim = x.shape
    y_dim = params[-1][0].shape[1]

    # --- batch tile selection: lane axis => multiple of 128 ---
    b128 = ((B + 127) // 128) * 128              # batch rounded up to a lane multiple
    tb = max(128, (int(tb) // 128) * 128)
    tb = min(tb, b128)
    # Guarantee >= 2 grid steps when the batch allows it (v7x megacore has 2 TCs).
    if b128 >= 2 * 128 and tb > b128 // 2:
        tb = max(128, ((b128 // 2) // 128) * 128)
    n_tiles = pl.cdiv(b128, tb)
    b_pad = n_tiles * tb

    # Feature-major input: x^T as bf16, ragged tail zero-padded along lanes.
    # Transpose + cast + pad fuse into a single XLA copy (the transpose has to
    # materialize anyway); padded columns only produce garbage columns that are
    # sliced off below (rows/columns are independent: dot + bias + relu only).
    x_t = jnp.pad(x.T.astype(jnp.bfloat16), ((0, 0), (0, b_pad - B)))

    # Pre-transpose / pre-cast weights once (no in-kernel weight casts); f32 biases.
    flat = []
    for w, b in params:
        flat.append(w.T.astype(jnp.bfloat16))            # (out, in) bf16 MXU operand
        flat.append(b.reshape(-1, 1).astype(jnp.float32))  # (out, 1) f32 bias

    # x / y tiles walk the batch grid; weights & biases are full-array blocks with a
    # constant index_map -> VMEM-resident across all grid steps (single fetch).
    in_specs = [pl.BlockSpec((x_dim, tb), lambda i: (0, i))]
    for arr in flat:
        in_specs.append(pl.BlockSpec(arr.shape, lambda i: (0, 0)))

    out = pl.pallas_call(
        dense_mlp_kernel,
        out_shape=jax.ShapeDtypeStruct((y_dim, b_pad), jnp.float32),
        grid=(n_tiles,),
        in_specs=in_specs,
        out_specs=pl.BlockSpec((y_dim, tb), lambda i: (0, i)),
        compiler_params=pltpu.CompilerParams(
            dimension_semantics=("parallel",),   # shard batch tiles across v7x's 2 TCs
        ),
    )(x_t, *flat)

    return out[:, :B].T                                   # back to (B, y_dim)


def init_params(key, x_dim, y_dim=2):
    """Deterministic PyTorch-style Linear init: U(-1/sqrt(fan_in), 1/sqrt(fan_in))."""
    dims = [x_dim, 30, 20, 15, 10, 5, y_dim]
    params = []
    for i in range(len(dims) - 1):
        fan_in, fan_out = dims[i], dims[i + 1]
        key, kw, kb = jax.random.split(key, 3)
        bound = 1.0 / jnp.sqrt(jnp.float32(fan_in))
        # stored as (in, out) / (1, out), i.e. the math layout of x @ W + b
        w = jax.random.uniform(kw, (fan_in, fan_out), jnp.float32, -bound, bound)
        b = jax.random.uniform(kb, (1, fan_out), jnp.float32, -bound, bound)
        params.append((w, b))
    return params


def reference_forward(x, params):
    """Pure-JAX f32 reference matching the PyTorch module's forward (y_pre, no sigmoid)."""
    h = x
    for i, (w, b) in enumerate(params):
        h = h @ w + b
        if i != len(params) - 1:
            h = jnp.maximum(h, 0.0)
    return h


if __name__ == "__main__":
    key = jax.random.PRNGKey(0)
    # Small test shapes; batch deliberately NOT a multiple of 128 to exercise the
    # ragged-tail padding AND big enough to give a multi-step batch grid
    # (B=300 -> b128=384 -> tb=128, 3 grid steps).
    x_dim, y_dim, batch = 32, 2, 300

    kx, kp = jax.random.split(key)
    x = jax.random.normal(kx, (batch, x_dim), jnp.float32)
    params = init_params(kp, x_dim, y_dim)

    y = dense_forward(x, params)
    y = jax.block_until_ready(y)

    y_ref = reference_forward(x, params)
    assert y.shape == (batch, y_dim)
    # bf16 MXU operands (f32 accumulation) -> loosened tolerance vs the f32 reference.
    assert jnp.allclose(y, y_ref, atol=5e-2, rtol=5e-2), "mismatch vs JAX reference"

    print("KERNEL_OK")
</pallas_src>

<mosaic_0001>
module attributes {stable_mosaic.version = 11 : i64} {
  func.func @dense_mlp_kernel(%arg0: i32, %arg1: memref<32x128xbf16, #tpu.memory_space<vmem>>, %arg2: memref<30x32xbf16, #tpu.memory_space<vmem>>, %arg3: memref<30x1xf32, #tpu.memory_space<vmem>>, %arg4: memref<20x30xbf16, #tpu.memory_space<vmem>>, %arg5: memref<20x1xf32, #tpu.memory_space<vmem>>, %arg6: memref<15x20xbf16, #tpu.memory_space<vmem>>, %arg7: memref<15x1xf32, #tpu.memory_space<vmem>>, %arg8: memref<10x15xbf16, #tpu.memory_space<vmem>>, %arg9: memref<10x1xf32, #tpu.memory_space<vmem>>, %arg10: memref<5x10xbf16, #tpu.memory_space<vmem>>, %arg11: memref<5x1xf32, #tpu.memory_space<vmem>>, %arg12: memref<2x5xbf16, #tpu.memory_space<vmem>>, %arg13: memref<2x1xf32, #tpu.memory_space<vmem>>, %arg14: memref<2x128xf32, #tpu.memory_space<vmem>>) attributes {dimension_semantics = [#tpu.dimension_semantics<parallel>], iteration_bounds = array<i64: 3>, scalar_prefetch = 0 : i64, scratch_operands = 0 : i64, tpu.core_type = #tpu.core_type<tc>, window_params = [{transform_indices = @transform_0, window_bounds = array<i64: 32, 128>}, {pipeline_mode = #tpu.pipeline_mode<synchronous>, transform_indices = @transform_1, window_bounds = array<i64: 30, 32>}, {pipeline_mode = #tpu.pipeline_mode<synchronous>, transform_indices = @transform_2, window_bounds = array<i64: 30, 1>}, {pipeline_mode = #tpu.pipeline_mode<synchronous>, transform_indices = @transform_3, window_bounds = array<i64: 20, 30>}, {pipeline_mode = #tpu.pipeline_mode<synchronous>, transform_indices = @transform_4, window_bounds = array<i64: 20, 1>}, {pipeline_mode = #tpu.pipeline_mode<synchronous>, transform_indices = @transform_5, window_bounds = array<i64: 15, 20>}, {pipeline_mode = #tpu.pipeline_mode<synchronous>, transform_indices = @transform_6, window_bounds = array<i64: 15, 1>}, {pipeline_mode = #tpu.pipeline_mode<synchronous>, transform_indices = @transform_7, window_bounds = array<i64: 10, 15>}, {pipeline_mode = #tpu.pipeline_mode<synchronous>, transform_indices = @transform_8, window_bounds = array<i64: 10, 1>}, {pipeline_mode = #tpu.pipeline_mode<synchronous>, transform_indices = @transform_9, window_bounds = array<i64: 5, 10>}, {pipeline_mode = #tpu.pipeline_mode<synchronous>, transform_indices = @transform_10, window_bounds = array<i64: 5, 1>}, {pipeline_mode = #tpu.pipeline_mode<synchronous>, transform_indices = @transform_11, window_bounds = array<i64: 2, 5>}, {pipeline_mode = #tpu.pipeline_mode<synchronous>, transform_indices = @transform_12, window_bounds = array<i64: 2, 1>}, {transform_indices = @transform_13, window_bounds = array<i64: 2, 128>}]} {
    %c0 = arith.constant 0 : index
    %c0_0 = arith.constant 0 : index
    %0 = vector.load %arg1[%c0, %c0_0] : memref<32x128xbf16, #tpu.memory_space<vmem>>, vector<32x128xbf16>
    %c0_1 = arith.constant 0 : index
    %c0_2 = arith.constant 0 : index
    %1 = vector.load %arg2[%c0_1, %c0_2] : memref<30x32xbf16, #tpu.memory_space<vmem>>, vector<30x32xbf16>
    %cst = arith.constant dense<0.000000e+00> : vector<30x128xf32>
    %2 = tpu.matmul %1, %0, %cst {dimension_numbers = #tpu.dot_dimension_numbers<[1], [0], [0], [1], [0, 0, 1, 1], [], []>} : vector<30x32xbf16>, vector<32x128xbf16>, vector<30x128xf32> -> vector<30x128xf32>
    %c0_3 = arith.constant 0 : index
    %c0_4 = arith.constant 0 : index
    %3 = vector.load %arg3[%c0_3, %c0_4] : memref<30x1xf32, #tpu.memory_space<vmem>>, vector<30x1xf32>
    %4 = vector.broadcast %3 : vector<30x1xf32> to vector<30x128xf32>
    %5 = arith.addf %2, %4 : vector<30x128xf32>
    %cst_5 = arith.constant 0.000000e+00 : f32
    %6 = vector.broadcast %cst_5 : f32 to vector<30x128xf32>
    %7 = arith.maximumf %5, %6 : vector<30x128xf32>
    %8 = arith.truncf %7 : vector<30x128xf32> to vector<30x128xbf16>
    %c0_6 = arith.constant 0 : index
    %c0_7 = arith.constant 0 : index
    %9 = vector.load %arg4[%c0_6, %c0_7] : memref<20x30xbf16, #tpu.memory_space<vmem>>, vector<20x30xbf16>
    %cst_8 = arith.constant dense<0.000000e+00> : vector<20x128xf32>
    %10 = tpu.matmul %9, %8, %cst_8 {dimension_numbers = #tpu.dot_dimension_numbers<[1], [0], [0], [1], [0, 0, 1, 1], [], []>} : vector<20x30xbf16>, vector<30x128xbf16>, vector<20x128xf32> -> vector<20x128xf32>
    %c0_9 = arith.constant 0 : index
    %c0_10 = arith.constant 0 : index
    %11 = vector.load %arg5[%c0_9, %c0_10] : memref<20x1xf32, #tpu.memory_space<vmem>>, vector<20x1xf32>
    %12 = vector.broadcast %11 : vector<20x1xf32> to vector<20x128xf32>
    %13 = arith.addf %10, %12 : vector<20x128xf32>
    %cst_11 = arith.constant 0.000000e+00 : f32
    %14 = vector.broadcast %cst_11 : f32 to vector<20x128xf32>
    %15 = arith.maximumf %13, %14 : vector<20x128xf32>
    %16 = arith.truncf %15 : vector<20x128xf32> to vector<20x128xbf16>
    %c0_12 = arith.constant 0 : index
    %c0_13 = arith.constant 0 : index
    %17 = vector.load %arg6[%c0_12, %c0_13] : memref<15x20xbf16, #tpu.memory_space<vmem>>, vector<15x20xbf16>
    %cst_14 = arith.constant dense<0.000000e+00> : vector<15x128xf32>
    %18 = tpu.matmul %17, %16, %cst_14 {dimension_numbers = #tpu.dot_dimension_numbers<[1], [0], [0], [1], [0, 0, 1, 1], [], []>} : vector<15x20xbf16>, vector<20x128xbf16>, vector<15x128xf32> -> vector<15x128xf32>
    %c0_15 = arith.constant 0 : index
    %c0_16 = arith.constant 0 : index
    %19 = vector.load %arg7[%c0_15, %c0_16] : memref<15x1xf32, #tpu.memory_space<vmem>>, vector<15x1xf32>
    %20 = vector.broadcast %19 : vector<15x1xf32> to vector<15x128xf32>
    %21 = arith.addf %18, %20 : vector<15x128xf32>
    %cst_17 = arith.constant 0.000000e+00 : f32
    %22 = vector.broadcast %cst_17 : f32 to vector<15x128xf32>
    %23 = arith.maximumf %21, %22 : vector<15x128xf32>
    %24 = arith.truncf %23 : vector<15x128xf32> to vector<15x128xbf16>
    %c0_18 = arith.constant 0 : index
    %c0_19 = arith.constant 0 : index
    %25 = vector.load %arg8[%c0_18, %c0_19] : memref<10x15xbf16, #tpu.memory_space<vmem>>, vector<10x15xbf16>
    %cst_20 = arith.constant dense<0.000000e+00> : vector<10x128xf32>
    %26 = tpu.matmul %25, %24, %cst_20 {dimension_numbers = #tpu.dot_dimension_numbers<[1], [0], [0], [1], [0, 0, 1, 1], [], []>} : vector<10x15xbf16>, vector<15x128xbf16>, vector<10x128xf32> -> vector<10x128xf32>
    %c0_21 = arith.constant 0 : index
    %c0_22 = arith.constant 0 : index
    %27 = vector.load %arg9[%c0_21, %c0_22] : memref<10x1xf32, #tpu.memory_space<vmem>>, vector<10x1xf32>
    %28 = vector.broadcast %27 : vector<10x1xf32> to vector<10x128xf32>
    %29 = arith.addf %26, %28 : vector<10x128xf32>
    %cst_23 = arith.constant 0.000000e+00 : f32
    %30 = vector.broadcast %cst_23 : f32 to vector<10x128xf32>
    %31 = arith.maximumf %29, %30 : vector<10x128xf32>
    %32 = arith.truncf %31 : vector<10x128xf32> to vector<10x128xbf16>
    %c0_24 = arith.constant 0 : index
    %c0_25 = arith.constant 0 : index
    %33 = vector.load %arg10[%c0_24, %c0_25] : memref<5x10xbf16, #tpu.memory_space<vmem>>, vector<5x10xbf16>
    %cst_26 = arith.constant dense<0.000000e+00> : vector<5x128xf32>
    %34 = tpu.matmul %33, %32, %cst_26 {dimension_numbers = #tpu.dot_dimension_numbers<[1], [0], [0], [1], [0, 0, 1, 1], [], []>} : vector<5x10xbf16>, vector<10x128xbf16>, vector<5x128xf32> -> vector<5x128xf32>
    %c0_27 = arith.constant 0 : index
    %c0_28 = arith.constant 0 : index
    %35 = vector.load %arg11[%c0_27, %c0_28] : memref<5x1xf32, #tpu.memory_space<vmem>>, vector<5x1xf32>
    %36 = vector.broadcast %35 : vector<5x1xf32> to vector<5x128xf32>
    %37 = arith.addf %34, %36 : vector<5x128xf32>
    %cst_29 = arith.constant 0.000000e+00 : f32
    %38 = vector.broadcast %cst_29 : f32 to vector<5x128xf32>
    %39 = arith.maximumf %37, %38 : vector<5x128xf32>
    %40 = arith.truncf %39 : vector<5x128xf32> to vector<5x128xbf16>
    %c0_30 = arith.constant 0 : index
    %c0_31 = arith.constant 0 : index
    %41 = vector.load %arg12[%c0_30, %c0_31] : memref<2x5xbf16, #tpu.memory_space<vmem>>, vector<2x5xbf16>
    %cst_32 = arith.constant dense<0.000000e+00> : vector<2x128xf32>
    %42 = tpu.matmul %41, %40, %cst_32 {dimension_numbers = #tpu.dot_dimension_numbers<[1], [0], [0], [1], [0, 0, 1, 1], [], []>} : vector<2x5xbf16>, vector<5x128xbf16>, vector<2x128xf32> -> vector<2x128xf32>
    %c0_33 = arith.constant 0 : index
    %c0_34 = arith.constant 0 : index
    %43 = vector.load %arg13[%c0_33, %c0_34] : memref<2x1xf32, #tpu.memory_space<vmem>>, vector<2x1xf32>
    %44 = vector.broadcast %43 : vector<2x1xf32> to vector<2x128xf32>
    %45 = arith.addf %42, %44 : vector<2x128xf32>
    %c0_35 = arith.constant 0 : index
    %c0_36 = arith.constant 0 : index
    %46 = vector.load %arg14[%c0_35, %c0_36] : memref<2x128xf32, #tpu.memory_space<vmem>>, vector<2x128xf32>
    tpu.vector_store %arg14[%c0_35, %c0_36], %45 {strides = array<i32>} : memref<2x128xf32, #tpu.memory_space<vmem>>, vector<2x128xf32>,
    return
  }
  func.func @transform_0(%arg0: i32) -> (i32, i32) {
    %c0_i32 = arith.constant 0 : i32
    %c0_i32_0 = arith.constant 0 : i32
    return %c0_i32, %arg0 : i32, i32
  }
  func.func @transform_1(%arg0: i32) -> (i32, i32) {
    %c0_i32 = arith.constant 0 : i32
    %c0_i32_0 = arith.constant 0 : i32
    %c0_i32_1 = arith.constant 0 : i32
    return %c0_i32, %c0_i32_0 : i32, i32
  }
  func.func @transform_2(%arg0: i32) -> (i32, i32) {
    %c0_i32 = arith.constant 0 : i32
    %c0_i32_0 = arith.constant 0 : i32
    %c0_i32_1 = arith.constant 0 : i32
    return %c0_i32, %c0_i32_0 : i32, i32
  }
  func.func @transform_3(%arg0: i32) -> (i32, i32) {
    %c0_i32 = arith.constant 0 : i32
    %c0_i32_0 = arith.constant 0 : i32
    %c0_i32_1 = arith.constant 0 : i32
    return %c0_i32, %c0_i32_0 : i32, i32
  }
  func.func @transform_4(%arg0: i32) -> (i32, i32) {
    %c0_i32 = arith.constant 0 : i32
    %c0_i32_0 = arith.constant 0 : i32
    %c0_i32_1 = arith.constant 0 : i32
    return %c0_i32, %c0_i32_0 : i32, i32
  }
  func.func @transform_5(%arg0: i32) -> (i32, i32) {
    %c0_i32 = arith.constant 0 : i32
    %c0_i32_0 = arith.constant 0 : i32
    %c0_i32_1 = arith.constant 0 : i32
    return %c0_i32, %c0_i32_0 : i32, i32
  }
  func.func @transform_6(%arg0: i32) -> (i32, i32) {
    %c0_i32 = arith.constant 0 : i32
    %c0_i32_0 = arith.constant 0 : i32
    %c0_i32_1 = arith.constant 0 : i32
    return %c0_i32, %c0_i32_0 : i32, i32
  }
  func.func @transform_7(%arg0: i32) -> (i32, i32) {
    %c0_i32 = arith.constant 0 : i32
    %c0_i32_0 = arith.constant 0 : i32
    %c0_i32_1 = arith.constant 0 : i32
    return %c0_i32, %c0_i32_0 : i32, i32
  }
  func.func @transform_8(%arg0: i32) -> (i32, i32) {
    %c0_i32 = arith.constant 0 : i32
    %c0_i32_0 = arith.constant 0 : i32
    %c0_i32_1 = arith.constant 0 : i32
    return %c0_i32, %c0_i32_0 : i32, i32
  }
  func.func @transform_9(%arg0: i32) -> (i32, i32) {
    %c0_i32 = arith.constant 0 : i32
    %c0_i32_0 = arith.constant 0 : i32
    %c0_i32_1 = arith.constant 0 : i32
    return %c0_i32, %c0_i32_0 : i32, i32
  }
  func.func @transform_10(%arg0: i32) -> (i32, i32) {
    %c0_i32 = arith.constant 0 : i32
    %c0_i32_0 = arith.constant 0 : i32
    %c0_i32_1 = arith.constant 0 : i32
    return %c0_i32, %c0_i32_0 : i32, i32
  }
  func.func @transform_11(%arg0: i32) -> (i32, i32) {
    %c0_i32 = arith.constant 0 : i32
    %c0_i32_0 = arith.constant 0 : i32
    %c0_i32_1 = arith.constant 0 : i32
    return %c0_i32, %c0_i32_0 : i32, i32
  }
  func.func @transform_12(%arg0: i32) -> (i32, i32) {
    %c0_i32 = arith.constant 0 : i32
    %c0_i32_0 = arith.constant 0 : i32
    %c0_i32_1 = arith.constant 0 : i32
    return %c0_i32, %c0_i32_0 : i32, i32
  }
  func.func @transform_13(%arg0: i32) -> (i32, i32) {
    %c0_i32 = arith.constant 0 : i32
    %c0_i32_0 = arith.constant 0 : i32
    return %c0_i32, %arg0 : i32, i32
  }
}

</mosaic_0001>

<bundles_post_ra>
// kernel: tpu_custom_call.1
= control target key start
LH: loop header
LB: loop body
LE: loop exit
PB: predicated region body
PF: predicated region fallthrough
CT: control target
= control target key end

     0   :  { %s1502_s0 = inlined_call_operand.vmem [shape: bf16[32,384], index: 0, kind: input, shape index: {}]   ;;  %s1503_s1 = inlined_call_operand.vmem [shape: bf16[30,32], index: 1, kind: input, shape index: {}]   ;;  %s1504_s2 = inlined_call_operand.vmem [shape: f32[30,1], index: 2, kind: input, shape index: {}]   ;;  %s1505_s3 = inlined_call_operand.vmem [shape: bf16[20,30], index: 3, kind: input, shape index: {}]   ;;  %s1506_s4 = inlined_call_operand.vmem [shape: f32[20,1], index: 4, kind: input, shape index: {}]   ;;  %s1507_s5 = inlined_call_operand.vmem [shape: bf16[15,20], index: 5, kind: input, shape index: {}]   ;;  %s1508_s6 = inlined_call_operand.vmem [shape: f32[15,1], index: 6, kind: input, shape index: {}]   ;;  %s1509_s7 = inlined_call_operand.vmem [shape: bf16[10,15], index: 7, kind: input, shape index: {}]   ;;  %s1510_s8 = inlined_call_operand.vmem [shape: f32[10,1], index: 8, kind: input, shape index: {}]   ;;  %s1511_s9 = inlined_call_operand.vmem [shape: bf16[5,10], index: 9, kind: input, shape index: {}]   ;;  %s1512_s10 = inlined_call_operand.vmem [shape: f32[5,1], index: 10, kind: input, shape index: {}]   ;;  %s1513_s11 = inlined_call_operand.vmem [shape: bf16[2,5], index: 11, kind: input, shape index: {}]   ;;  %s1514_s12 = inlined_call_operand.vmem [shape: f32[2,1], index: 12, kind: input, shape index: {}]   ;;  %s1515_s13 = inlined_call_operand.hbm [shape: f32[2,384], index: 13, kind: output, shape index: {}]  }
   0x1   :  { %1517 = sst [smem:[#allocation7_spill]] %s1502_s0 }
   0x2   :  { %1518 = sst [smem:[#allocation8_spill]] %s1503_s1 }
   0x3   :  { %18 = vsyncpa [#allocation4], 0 }
   0x4   :  { %20 = vsyncpa [#allocation4 + $0x1], 0  ;;  %s1320_s25 = smov 0   ;;  %s1322_s26 = smov 0  }
   0x5   :  { %s1324_s27 = smov 0   ;;  %s1326_s28 = smov 0  }
   0x6 LB: > { %s1516_s29 = sadd.s32 4294967295, %s1243_s28   ;;  %s1042_s30 = sadd.s32 4294967294, %s1243_s28   ;;  %s1243_s28 = sphi %s1326_s28, %s1529_s28   ;;  %s1239_s27 = sphi %s1324_s27, %s1528_s27   ;;  %s1235_s26 = sphi %s1322_s26, %s1527_s26   ;;  %s1231_s25 = sphi %s1320_s25, %s1526_s25  }
   0x7   : > { %s1343_s14 = sadd.s32 1, %s1243_s28   ;;  %s33_s15 = sadd.s32 1, %s1239_s27 }
   0x8   : > { %s30_s16 = ssub.s32 %s1243_s28, %s1343_s14  ;;  %p40_p0 = scmp.ne.s32.totalorder %s1239_s27, %s1235_s26 }
   0x9   : > { %p31_p1 = scmp.eq.s32.totalorder %s30_s16, 0  ;;  %p41_p2 = scmp.eq.s32.totalorder %s1243_s28, 0 }
   0xa   : > { %p322_p3 = scmp.eq.s32.totalorder %s1516_s29, 2  ;;  %p327_p4 = scmp.ne.s32.totalorder %s1235_s26, %s1231_s25 }
   0xb   : > { %s1356_s17 = scalar_select %p31_p1, %s1239_s27, %s33_s15  }
   0xc   : > { %p42_p5 = por %p41_p2, %p40_p0  ;;  %p1358_p6 = por %p322_p3, %p40_p0 }
   0xd   : > { %1519 = sst [smem:[#allocation6_spill]] %s1356_s17  ;;  %p328_p7 = scmp.eq.s32.totalorder %s1042_s30, 2 }
   0xe   : > { %p1044_p9 = scmp.ge.s32.totalorder %s1243_s28, 3 }
   0xf   : > { %p1362_p8 = por %p328_p7, %p327_p4 }
  0x10   : > { %380 = sbr.rel (%p1044_p9) target bundleno = 33 (0x21), region = 64 }
  0x15   : > { %383 = sbr.rel (!%p42_p5) target bundleno = 33 (0x21), region = 68  ;;  %s385_s20 = sand.u32 (%p42_p5), 1, %s1239_s27  }
  0x16   : > { %s1046_s21 = sshll.u32 (%p42_p5), %s1243_s28, 2  ;;  %s1045_s22 = sshll.u32 (%p42_p5), %s385_s20, 4 }
  0x17   : > { %s1522_s0 = sld [smem:[#allocation7_spill]] (%p42_p5)  ;;  %s387_s30 = scalar_lea.vmem (%p42_p5), [#allocation2], %s1045_s22 }
  0x1d   : > { %s389_s15 = scalar_lea.vmem %s1522_s0, %s1046_s21 }
  0x1e   : > { %v406_v0 = vld [vmem:[%s389_s15] sm:$0xf]  ;;  %v408_v1 = vld [vmem:[%s389_s15 + $0xc] sm:$0xf]  ;;  %v410_v2 = vld [vmem:[%s389_s15 + $0x18] sm:$0xf] }
  0x1f   : > { %407 = vst [vmem:[%s387_s30] sm:$0xf] %v406_v0  ;;  %409 = vst [vmem:[%s387_s30 + $0x4] sm:$0xf] %v408_v1  ;;  %v412_v3 = vld [vmem:[%s389_s15 + $0x24] sm:$0xf] }
  0x20   : > { %411 = vst [vmem:[%s387_s30 + $0x8] sm:$0xf] %v410_v2  ;;  %413 = vst [vmem:[%s387_s30 + $0xc] sm:$0xf] %v412_v3 }
  0x21 PF: > { %p1047_p10 = scmp.ge.s32.totalorder %s1243_s28, 1  ;;  %p444_p11 = scmp.lt.s32.totalorder %s1243_s28, 4 }
  0x23   : > { %p445_p12 = pnand %p1047_p10, %p444_p11 }
  0x24   : > { %s1375_s16 = sand.u32 (!%p445_p12), 1, %s1235_s26   ;;  %s1523_s1 = sld [smem:[#allocation8_spill]] (!%p445_p12) }
  0x25   : > { %448 = sbr.rel (%p445_p12) target bundleno = 1300 (0x514), region = 109  ;;  %s1048_s22 = sshll.u32 (!%p445_p12), %s1375_s16, 4 }
  0x26   : > { %s453_s29 = scalar_lea.vmem (!%p445_p12), [#allocation2], %s1048_s22  ;;  %s1049_s0 = sshll.u32 (!%p445_p12), %s1375_s16, 1 }
  0x27   : > { %s1524_s17 = sadd.s32 (!%p445_p12), 4294967295, %s1243_s28   ;;  %s964_s15 = scalar_lea.sflag (!%p445_p12), [#allocation4], %s1375_s16 }
  0x28   : > { %s1067_s30 = sshll.u32 (!%p445_p12), %s1524_s17, 5 }
  0x29   : > { %s1460_s24 = scalar_lea.hbm (!%p445_p12), %s1515_s13, %s1067_s30 }
  0x2a   : > { %v1177_v4 = vld [vmem:[%s1523_s1] sm:$0xff]   ;;  %vm549_vm0 = vcmask 261120   ;;  %v505_v5 = vld [vmem:[%s1504_s2 + $0x10] sm:$0xff]  ;;  %v1175_v7 = vld [vmem:[%s453_s29 + $0x8] sm:$0xff]   ;;  %v1245_v8 = vmov 0   ;;  %vm640_vm1 = vcmask 244736  }
  0x2b   : > { %1091 = vmatprep.mubr.msk.bf16.mxu0 %vm549_vm0, %v1177_v4  ;;  %v503_v6 = vld [vmem:[%s1504_s2] sm:$0xff]  ;;  %1173 = vset.pattern.permute.xlu0 %v1245_v8  ;;  %v506_v10 = vld [vmem:[%s1504_s2 + $0x18] sm:$0x3f]  ;;  %v504_v11 = vld [vmem:[%s1504_s2 + $0x8] sm:$0xff]  ;;  %vm647_vm2 = vcmask 1046528   ;;  %v1246_v43 = vmov 0.0  }
  0x2c   : > { %1174 = vset.pattern.permute.xlu1 %v1245_v8  ;;  %v1176_v9 = vld [vmem:[%s453_s29] sm:$0xff]   ;;  %519 = vperm.xlu0 %1173, %v505_v5   ;;  %v1178_v12 = vld [vmem:[%s1523_s1 + $0x8] sm:$0x7f]   ;;  %vm1247_vm3 = vmmov 0   ;;  %vm727_vm4 = vcmask 1041408   ;;  %vm723_vm5 = vcmask 162816  }
  0x2d   : > { %509 = vperm.xlu1 %1174, %v503_v6   ;;  %1087 = vmatprep.subr.bf16.mxu0 %v1175_v7  ;;  %v616_v13 = vld [vmem:[%s1506_s4 + $0x10] sm:$0xf]  ;;  %v614_v14 = vld [vmem:[%s1506_s4] sm:$0xff]  ;;  %v615_v15 = vld [vmem:[%s1506_s4 + $0x8] sm:$0xff]  ;;  %vm798_vm6 = vcmask 1047552   ;;  %v1248_v3 = vmov 65535  }
  0x2e   : > { %1088 = vmatpush3.bf16.msra.mxu0 %v1175_v7  ;;  %v706_v16 = vld [vmem:[%s1508_s6] sm:$0xff]  ;;  %v707_v17 = vld [vmem:[%s1508_s6 + $0x8] sm:$0x7f]  ;;  %v799_v4 = vsel %vm647_vm2, 4294967295, %v1248_v3  ;;  %vm794_vm7 = vcmask 121856   ;;  %vm859_vm8 = vcmask 1044480  }
  0x2f   : > { %1089 = vmatprep.subr.bf16.mxu0 %v1176_v9  ;;  %v777_v18 = vld [vmem:[%s1510_s8] sm:$0xff]  ;;  %v778_v19 = vld [vmem:[%s1510_s8 + $0x8] sm:$0x3]  ;;  %vm855_vm9 = vcmask 80896   ;;  %vm916_vm10 = vcmask 1042432   ;;  %vm912_vm11 = vcmask 39936  }
  0x30   : > { %524 = vperm.xlu0 %1173, %v506_v10   ;;  %v849_v20 = vld [vmem:[%s1512_s10] sm:$0x1f]  ;;  %v1180_v42 = vld [vmem:[%s1505_s3 + $0x8] ss:$0 sps:$4 sm:$0x33]   ;;  %s493_s29 = scalar_lea.vmem [#allocation3], %s1049_s0 }
  0x31   : > { %514 = vperm.xlu1 %1174, %v504_v11   ;;  %v906_v21 = vld [vmem:[%s1514_s12] sm:$0x3]  ;;  %s977_s20 = sshll.u32 %s493_s29, 4  ;;  %s1249_s0 = smov [#allocation3]   ;;  %s1462_s20 = int_to_ptr.vmem [resolvable:$true] %s977_s20 }
  0x32   : > { %1090 = vmatpush3.bf16.msra.mxu0 %v1176_v9  ;;  %v1179_v22 = vld [vmem:[%s1505_s3] sm:$0xff]   ;;  %v800_v9 = vsel %vm798_vm6, %v799_v4, 0  ;;  %s1183_s22 = scalar_lea.vmem %s1462_s20, 32  ;;  %s1187_s17 = sshll.u32 %s1249_s0, 4  ;;  %s1188_s17 = int_to_ptr.vmem [resolvable:$false] %s1187_s17 }
  0x33   : > { %1099 = vmatprep.mubr.msk.bf16.mxu1 %vm640_vm1, %v1179_v22  ;;  %1103 = vmatprep.subr.bf16.mxu0 %v1246_v43  ;;  %v1181_v60 = vld [vmem:[%s1507_s5] sm:$0xff]   ;;  %p1184_p13 = scmp.ne.s32.totalorder %s1462_s20, %s1183_s22  ;;  %s1189_s21 = scalar_lea.vmem %s1188_s17, 64 }
  0x34   : > { %629 = vperm.xlu0 %1173, %v616_v13   ;;  %p1190_p2 = scmp.lt.s32.totalorder %s1462_s20, %s1188_s17  ;;  %p1191_p3 = scmp.lt.s32.totalorder %s1189_s21, %s1183_s22 }
  0x35   : > { %619 = vperm.xlu1 %1174, %v614_v14   ;;  %1092 = vmatmul.mubr.msk.bf16.vlgmr.msra.gmra.mxu0 %vm549_vm0, %v1178_v12  ;;  %v1182_v12 = vld [vmem:[%s1509_s7] sm:$0x1f]   ;;  %p1185_p0 = pnand %p1184_p13, %p1358_p6 }
  0x36   : > { %1107 = vmatprep.mubr.msk.bf16.mxu0 %vm1247_vm3, %v1246_v43  ;;  %p1192_p4 = por %p1191_p3, %p1190_p2 }
  0x37   : > { %p1186_p1 = pneg %p1185_p0 }
  0x38   : > { %624 = vperm.xlu0 %1173, %v615_v15  }
  0x39   : > { %710 = vperm.xlu1 %1174, %v706_v16   ;;  %p1193_p5 = pnand %p1192_p4, %p1186_p1 }
  0x3c   : > { %715 = vperm.xlu0 %1173, %v707_v17  }
  0x3d   : > { %781 = vperm.xlu1 %1174, %v777_v18  }
  0x40   : > { %786 = vperm.xlu0 %1173, %v778_v19  }
  0x41   : > { %852 = vperm.xlu1 %1174, %v849_v20  }
  0x44   : > { %909 = vperm.xlu0 %1173, %v906_v21  }
  0xa7   : > { %v520_v23 = vpop.permute.xlu0 %519 }
  0xa8   : > { %v510_v24 = vpop.permute.xlu1 %509 }
  0xab   : > { %v525_v28 = vpop.permute.xlu0 %524 }
  0xac   : > { %v515_v32 = vpop.permute.xlu1 %514 }
  0xaf   : > { %v630_v44 = vpop.permute.xlu0 %629 }
  0xb0   : > { %v620_v49 = vpop.permute.xlu1 %619 }
  0xb3   : > { %v625_v53 = vpop.permute.xlu0 %624 }
  0xb4   : > { %v711_v62 = vpop.permute.xlu1 %710 }
  0xb7   : > { %v716_v1 = vpop.permute.xlu0 %715 }
  0xb8   : > { %v782_v14 = vpop.permute.xlu1 %781 }
  0xbb   : > { %v787_v17 = vpop.permute.xlu0 %786 }
  0xf5   : > { %v1093_v25 = vpop.f32.mrf.mxu0 }
  0xf6   : > { %v599_v27 = vadd.f32 %v1093_v25, %v520_v23  ;;  %v848_v25 = vld [vmem:[%s1511_s9] sm:$0x7] }
  0xf7   : > { %v590_v26 = vpop.f32.mrf.mxu0 }
  0xf8   : > { %v591_v30 = vadd.f32 %v590_v26, %v510_v24  ;;  %v607_v34 = vmax.f32 %v599_v27, 0.0  ;;  %v853_v26 = vpop.permute.xlu1 %852 }
  0xf9   : > { %v1094_v29 = vpop.f32.mrf.mxu0 }
  0xfa   : > { %v602_v31 = vadd.f32 %v1094_v29, %v525_v28  ;;  %v605_v37 = vmax.f32 %v591_v30, 0.0  ;;  %v917_v29 = vsel %vm727_vm4, 4294967295, %v1248_v3 }
  0xfb   : > { %v593_v33 = vpop.f32.mrf.mxu0 }
  0xfc   : > { %v608_v35 = vmax.f32 %v602_v31, 0.0  ;;  %v594_v36 = vadd.f32 %v593_v33, %v515_v32  ;;  %v918_v32 = vsel %vm916_vm10, %v917_v29, 0 }
  0xfe   : > { %v606_v38 = vmax.f32 %v594_v36, 0.0  ;;  %v610_v39 = vpack.c.bf16 %v608_v35, %v607_v34 }
 0x100   : > { %v609_v40 = vpack.c.bf16 %v606_v38, %v605_v37  ;;  %1129 = vmatprep.subr.msk.bf16.mxu1 %vm647_vm2, %v610_v39  ;;  %v649_v41 = vsel %vm647_vm2, %v610_v39, 0  ;;  %v905_v37 = vld [vmem:[%s1513_s11] sm:$0x1]  ;;  %v910_v38 = vpop.permute.xlu0 %909 }
 0x101   : > { %1096 = vmatpush3.bf16.msra.mxu1 %v649_v41 }
 0x102   : > { %1097 = vmatprep.subr.bf16.mxu1 %v609_v40 }
 0x105   : > { %1098 = vmatpush3.bf16.msra.mxu1 %v609_v40 }
 0x106   : > { %1111 = vmatprep.subr.bf16.mxu1 %v1246_v43 }
 0x108   : > { %1100 = vmatmul.mubr.msk.bf16.vlgmr.msra.gmra.mxu1 %vm640_vm1, %v1180_v42 }
 0x109   : > { %1113 = vmatprep.mubr.msk.bf16.mxu1 %vm1247_vm3, %v1246_v43 }
 0x1c8   : > { %v1101_v45 = vpop.f32.mrf.mxu1 }
 0x1c9   : > { %v694_v46 = vadd.f32 %v1101_v45, %v630_v44 }
 0x1ca   : > { %v685_v47 = vpop.f32.mrf.mxu1 }
 0x1cb   : > { %v701_v48 = vmax.f32 %v694_v46, 0.0  ;;  %v686_v52 = vadd.f32 %v685_v47, %v620_v49 }
 0x1cc   : > { %v1102_v50 = vpop.f32.mrf.mxu1 }
 0x1cd   : > { %v703_v51 = vpack.c.bf16 %v701_v48, %v701_v48  ;;  %v699_v57 = vmax.f32 %v686_v52, 0.0 }
 0x1ce   : > { %v688_v54 = vpop.f32.mrf.mxu1 }
 0x1cf   : > { %v689_v55 = vadd.f32 %v688_v54, %v625_v53  ;;  %v729_v56 = vsel %vm727_vm4, %v703_v51, 0 }
 0x1d0   : > { %1104 = vmatpush3.bf16.msra.mxu0 %v729_v56 }
 0x1d1   : > { %v700_v58 = vmax.f32 %v689_v55, 0.0  ;;  %1105 = vmatprep.subr.bf16.mxu0 %v1246_v43 }
 0x1d3   : > { %v702_v59 = vpack.c.bf16 %v700_v58, %v699_v57 }
 0x1d5   : > { %1106 = vmatpush3.bf16.msra.mxu0 %v702_v59 }
 0x1d6   : > { %1117 = vmatprep.subr.bf16.mxu0 %v1246_v43 }
 0x1d8   : > { %1108 = vmatmul.mubr.msk.bf16.vlgmr.msra.gmra.mxu0 %vm723_vm5, %v1181_v60 }
 0x1d9   : > { %1119 = vmatprep.mubr.msk.bf16.mxu0 %vm1247_vm3, %v1246_v43 }
 0x298   : > { %v765_v61 = vpop.f32.mrf.mxu0 }
 0x299   : > { %v766_v0 = vadd.f32 %v765_v61, %v711_v62 }
 0x29a   : > { %v1109_v63 = vpop.f32.mrf.mxu0 }
 0x29b   : > { %v772_v7 = vmax.f32 %v766_v0, 0.0 }
 0x29c   : > { %v768_v2 = vpop.f32.mrf.mxu0 }
 0x29d   : > { %v769_v5 = vadd.f32 %v768_v2, %v716_v1 }
 0x29e   : > { %v1110_v6 = vpop.f32.mrf.mxu0 }
 0x29f   : > { %v773_v8 = vmax.f32 %v769_v5, 0.0 }
 0x2a1   : > { %v774_v10 = vpack.c.bf16 %v773_v8, %v772_v7 }
 0x2a3   : > { %v802_v11 = vand.u32 %v800_v9, %v774_v10 }
 0x2a5   : > { %1112 = vmatpush3.bf16.msra.mxu1 %v802_v11 }
 0x2a6   : > { %1123 = vmatprep.subr.bf16.mxu1 %v1246_v43 }
 0x2a8   : > { %1114 = vmatmul.mubr.msk.bf16.vlgmr.msra.gmra.mxu1 %vm794_vm7, %v1182_v12 }
 0x2a9   : > { %1125 = vmatprep.mubr.msk.bf16.mxu1 %vm1247_vm3, %v1246_v43 }
 0x368   : > { %v838_v13 = vpop.f32.mrf.mxu1 }
 0x369   : > { %v839_v16 = vadd.f32 %v838_v13, %v782_v14 }
 0x36a   : > { %v1115_v15 = vpop.f32.mrf.mxu1 }
 0x36b   : > { %v845_v21 = vmax.f32 %v839_v16, 0.0 }
 0x36c   : > { %v841_v18 = vpop.f32.mrf.mxu1 }
 0x36d   : > { %v842_v19 = vadd.f32 %v841_v18, %v787_v17 }
 0x36e   : > { %v1116_v20 = vpop.f32.mrf.mxu1 }
 0x36f   : > { %v846_v22 = vmax.f32 %v842_v19, 0.0 }
 0x371   : > { %v847_v23 = vpack.c.bf16 %v846_v22, %v845_v21 }
 0x373   : > { %v861_v24 = vsel %vm859_vm8, %v847_v23, 0 }
 0x374   : > { %1118 = vmatpush3.bf16.msra.mxu0 %v861_v24 }
 0x377   : > { %1120 = vmatmul.mubr.msk.bf16.vlgmr.msra.gmra.mxu0 %vm855_vm9, %v848_v25 }
 0x437   : > { %v897_v27 = vpop.f32.mrf.mxu0 }
 0x438   : > { %v898_v28 = vadd.f32 %v897_v27, %v853_v26 }
 0x439   : > { %v1121_v30 = vpop.f32.mrf.mxu0 }
 0x43a   : > { %v903_v31 = vmax.f32 %v898_v28, 0.0 }
 0x43b   : > { %v900_v33 = vpop.f32.mrf.mxu0 }
 0x43c   : > { %v904_v34 = vpack.c.bf16 %v903_v31, %v903_v31 }
 0x43d   : > { %v1122_v35 = vpop.f32.mrf.mxu0 }
 0x43e   : > { %v920_v36 = vand.u32 %v918_v32, %v904_v34 }
 0x440   : > { %1124 = vmatpush3.bf16.msra.mxu1 %v920_v36 }
 0x443   : > { %1126 = vmatmul.mubr.msk.bf16.vlgmr.msra.gmra.mxu1 %vm912_vm11, %v905_v37 }
 0x503   : > { %v956_v39 = vpop.f32.mrf.mxu1 }
 0x504   : > { %v957_v40 = vadd.f32 %v956_v39, %v910_v38 }
 0x505   : > { %v1127_v41 = vpop.f32.mrf.mxu1 }
 0x506   : > { %962 = vst [vmem:[%s493_s29] sm:$0x3] %v957_v40 }
 0x507   : > { %v959_v42 = vpop.f32.mrf.mxu1 }
 0x508   : > { %1196 = shalt.err (!%p1193_p5)
}
 0x509   : > { %s1197_s30 = scalar_lea.hbm %s1460_s24, 32  ;;  %s1201_s23 = scalar_lea.hbm %s1515_s13, 96 }
 0x50a   : > { %p1198_p7 = scmp.ne.s32.totalorder %s1460_s24, %s1197_s30  ;;  %p1202_p11 = scmp.lt.s32.totalorder %s1460_s24, %s1515_s13 }
 0x50b   : > { %p1203_p12 = scmp.lt.s32.totalorder %s1201_s23, %s1197_s30 }
 0x50c   : > { %p1199_p9 = pnand %p1198_p7, %p1358_p6 }
 0x50d   : > { %p1204_p13 = por %p1203_p12, %p1202_p11 }
 0x50e   : > { %p1200_p10 = pneg %p1199_p9 }
 0x510   : > { %p1205_p0 = pnand %p1204_p13, %p1200_p10 }
 0x512   : > { %1208 = shalt.err (!%p1205_p0)
}
 0x513   : > { %1130 = dma.vmem_to_hbm [thread:$0]  (%p1358_p6), %s1462_s20, 32, %s1460_s24, %s964_s15   ;;  %v1128_v43 = vpop.f32.mrf.mxu1 }
 0x514 PF: > { %p1136_p1 = scmp.ge.s32.totalorder %s1243_s28, 2  ;;  %s989_s22 = sand.u32 1, %s1231_s25  }
 0x515   : > { %s990_s1 = scalar_lea.sflag [#allocation4], %s989_s22 }
 0x516   : > { %p1133_p2 = pnand %p1136_p1, %p1362_p8 }
 0x518   : > { %p1134_p3 = pneg %p1133_p2 }
 0x51a   : > { %1226 = dma.done.wait (%p1134_p3), %s990_s1, 32  }
 0x51b   : > { %1228 = vsyncadd (%p1134_p3), %s990_s1, 4294967264  ;;  %s1525_s18 = sld [smem:[#allocation6_spill]]  ;;  %p23_p4 = scmp.ge.s32.totalorder %s1343_s14, 5  }
 0x51c   : > { %s1526_s25 = smov %s1235_s26  ;;  %s1527_s26 = smov %s1239_s27 }
 0x51d   : > { %s1529_s28 = smov %s1343_s14  ;;  %25 = sbr.rel (!%p23_p4) target bundleno = 6 (0x6), region = 153 }
 0x521   : > { %s1528_s27 = smov %s1525_s18 }
 0x522   :  { %995 = vsyncpa [#allocation4], 1 }
 0x523   :  { %997 = vsyncpa [#allocation4 + $0x1], 1 }

</bundles_post_ra>
